<compile_context>
chip_gen: v7x
topology: tpu7x:2x2x1
jax: 0.10.0
libtpu: 0.0.40
codegen_flags: <defaults>
</compile_context>

<pallas_src>
import functools

import numpy as np
import jax
import jax.numpy as jnp
from jax import lax
from jax.experimental import pallas as pl
from jax.experimental.pallas import tpu as pltpu

LANE = 128
MAX_TS = 512          # sublanes per tile -> up to 512*128 = 65536 points / grid step


def _round_up(x, m):
    return (x + m - 1) // m * m


def _cdiv(a, b):
    return (a + b - 1) // b


def _plan_tiles(n_elems, max_ts=MAX_TS):
    """Return (S, TS): total sublane rows (padded) and sublane rows per tile."""
    s_raw = max(1, _cdiv(n_elems, LANE))
    ts = min(max_ts, _round_up(s_raw, 8))      # multiple of 8 (sublane constraint)
    s = _round_up(s_raw, ts)                   # TS divides S
    return s, ts


def _divmod_const(x, d):
    """x // d, x % d for non-negative int32 x; shift/mask when d is a power of 2."""
    if d & (d - 1) == 0:
        shift = int(d).bit_length() - 1
        return x >> shift, x & (d - 1)
    return x // d, x % d


def _check_int32_key_bounds(sparse_shape, window_shape, batch_size):
    # TODO(synk): promote to a (high, low) int32 pair sort if this ever fires;
    # TPU Pallas vregs are 32-bit so a direct int64 key path is not emitted.
    n, m, _ = sparse_shape
    n2w, m2w, _ = window_shape
    n1 = int(np.ceil(n / n2w) + 1)
    m1 = int(np.ceil(m / m2w) + 1)
    N2, M2, N1, M1 = 2 * n2w, 2 * m2w, 2 * n1, 2 * m1
    batch_scale = n * m * 10
    max_x = (n - 1) + n2w // 2
    max_y = (m - 1) + m2w // 2
    x1, y1 = max_x // n2w, max_y // m2w
    x2, y2 = n2w - 1, m2w - 1
    bterm = (batch_size - 1) * batch_scale
    vx = (N1 * y1 + x1) * N2 * M2 + (M2 * x2 + y2) + bterm
    vy = (M1 * x1 + y1) * M2 * N2 + (N2 * y2 + x2) + bterm
    if max(vx, vy) >= 2 ** 31:
        raise ValueError("window-curve keys overflow int32 for this configuration")


# ----------------------------------------------------------------------------
# Pallas kernel 1: per-point window-curve sorting keys (elementwise hot path)
#   in : coords (3, TS, 128) int32, rows = (batch, y, x)
#   out: keys   (4, TS, 128) int32, rows = (vx, vy, vx_shift, vy_shift)
# ----------------------------------------------------------------------------
def _keys_kernel(coords_ref, keys_ref, *, sparse_shape, window_shape):
    n, m, _ = sparse_shape
    n2w, m2w, _ = window_shape
    n1 = int(np.ceil(n / n2w) + 1)
    m1 = int(np.ceil(m / m2w) + 1)
    N2, M2, N1, M1 = 2 * n2w, 2 * m2w, 2 * n1, 2 * m1
    batch_scale = sparse_shape[0] * sparse_shape[1] * 10

    b_term = coords_ref[0] * batch_scale        # hoisted: shared by all 4 keys
    y0 = coords_ref[1]
    x0 = coords_ref[2]

    for shifted, (row_x, row_y) in ((False, (0, 1)), (True, (2, 3))):
        if shifted:
            x = x0 + (n2w // 2)
            y = y0 + (m2w // 2)
        else:
            x = x0
            y = y0
        x1, x2 = _divmod_const(x, n2w)
        y1, y2 = _divmod_const(y, m2w)
        sgn_x1 = 1 - 2 * (x1 & 1)               # == (-1) ** x1 (non-negative coords)
        sgn_y1 = 1 - 2 * (y1 & 1)
        sgn_x2 = 1 - 2 * (x2 & 1)
        sgn_y2 = 1 - 2 * (y2 & 1)
        vx = (N1 * y1 + sgn_y1 * x1) * (N2 * M2) + sgn_y1 * (M2 * x2 + sgn_x2 * y2) + b_term
        vy = (M1 * x1 + sgn_x1 * y1) * (M2 * N2) + sgn_x1 * (N2 * y2 + sgn_y2 * x2) + b_term
        keys_ref[row_x, :, :] = vx
        keys_ref[row_y, :, :] = vy


# ----------------------------------------------------------------------------
# Pallas kernel 2 (fused): win2flat + flat2win from per-batch prefix sums.
#   win2flat[j] = j + pad_pre[batch(j)]                      (length L)
#   flat2win[j] = j - pad_pre[batch(j)] (- group_size in the padded tail,
#                 which duplicates the batch's last group)   (length Lp)
# Both are emitted as dense (TS, 128) tiles from the same iota; the wrapper
# flattens and slices to L / Lp.
# ----------------------------------------------------------------------------
def _mapping_kernel(bs_ref, bsp_ref, npb_ref, w2f_ref, f2w_ref, *,
                    batch_size, group_size, ts):
    base = pl.program_id(0) * (ts * LANE)
    idx = (base
           + lax.broadcasted_iota(jnp.int32, (ts, LANE), 0) * LANE
           + lax.broadcasted_iota(jnp.int32, (ts, LANE), 1))
    pad_pre = jnp.zeros((ts, LANE), jnp.int32)
    f2w = idx
    for bi in range(batch_size):
        pre = bsp_ref[bi] - bs_ref[bi]                     # scalar, hoisted (SMEM)
        # win2flat segment of this batch
        in_flat = (idx >= bs_ref[bi]) & (idx < bs_ref[bi + 1])
        pad_pre = jnp.where(in_flat, pre, pad_pre)
        # flat2win segment of this batch (+ tail duplicating the last group)
        in_pad = (idx >= bsp_ref[bi]) & (idx < bsp_ref[bi + 1])
        in_tail = idx >= bsp_ref[bi] + npb_ref[bi]
        adj = pre + jnp.where(in_tail, group_size, 0)
        f2w = jnp.where(in_pad, idx - adj, f2w)
    w2f_ref[...] = idx + pad_pre
    f2w_ref[...] = f2w
    # TODO(synk): if a batch has fewer than group_size points *and* needs padding,
    # PyTorch's tail-copy reads into the previous batch (or wraps on negative
    # indices); that degenerate case is not reproduced by the closed form above.


class FlattenedWindowMappingPallas:
    def __init__(self, window_shape, sparse_shape, group_size):
        self.window_shape = tuple(window_shape)
        self.sparse_shape = tuple(sparse_shape)
        self.group_size = int(group_size)

    def __call__(self, coords, batch_size):
        gs = self.group_size
        _check_int32_key_bounds(self.sparse_shape, self.window_shape, batch_size)

        coords_j = jnp.asarray(coords, dtype=jnp.int32)          # stays on device
        N = int(coords_j.shape[0])

        # Output lengths are data-dependent -> only the tiny per-batch counts
        # come to the host (shape glue for static output shapes).
        counts = jnp.bincount(coords_j[:, 0], length=batch_size)
        num_per_batch = np.asarray(counts).astype(np.int64)
        bs = np.concatenate([[0], np.cumsum(num_per_batch)]).astype(np.int32)
        npp = (num_per_batch + gs - 1) // gs * gs
        bsp = np.concatenate([[0], np.cumsum(npp)]).astype(np.int32)
        L = int(bs[-1])
        Lp = int(bsp[-1])

        # ------------------ sorting keys (Pallas) ------------------
        S, TS = _plan_tiles(N)
        Np = S * LANE
        # rows (batch, y, x); z is never used by the keys -> don't ship it.
        coords_sel = jnp.stack([coords_j[:, 0], coords_j[:, 2], coords_j[:, 3]], axis=0)
        coords_t = jnp.pad(coords_sel, ((0, 0), (0, Np - N))).reshape(3, S, LANE)

        keys = pl.pallas_call(
            functools.partial(_keys_kernel, sparse_shape=self.sparse_shape,
                              window_shape=self.window_shape),
            out_shape=jax.ShapeDtypeStruct((4, S, LANE), jnp.int32),
            grid=(S // TS,),
            in_specs=[pl.BlockSpec((3, TS, LANE), lambda i: (0, i, 0))],
            out_specs=pl.BlockSpec((4, TS, LANE), lambda i: (0, i, 0)),
            compiler_params=pltpu.CompilerParams(dimension_semantics=("parallel",)),
        )(coords_t)
        keys = keys.reshape(4, Np)[:, :N]

        # argsort glue (no TPU Pallas sort primitive) -> one batched stable XLA sort.
        order = jnp.argsort(keys, axis=1, stable=True)

        # ------------------ win2flat / flat2win (one fused Pallas call) -------
        bs_j = jnp.asarray(bs, dtype=jnp.int32)
        bsp_j = jnp.asarray(bsp, dtype=jnp.int32)
        npb_j = jnp.asarray(num_per_batch, dtype=jnp.int32)

        # Lp >= L always (per-batch padded counts >= raw counts), so one slab
        # sized off Lp covers both outputs.
        SM, TSM = _plan_tiles(Lp)
        win2flat_p, flat2win_p = pl.pallas_call(
            functools.partial(_mapping_kernel, batch_size=batch_size,
                              group_size=gs, ts=TSM),
            out_shape=(jax.ShapeDtypeStruct((SM, LANE), jnp.int32),
                       jax.ShapeDtypeStruct((SM, LANE), jnp.int32)),
            grid=(SM // TSM,),
            in_specs=[pl.BlockSpec(memory_space=pltpu.MemorySpace.SMEM)] * 3,
            out_specs=(pl.BlockSpec((TSM, LANE), lambda i: (i, 0)),
                       pl.BlockSpec((TSM, LANE), lambda i: (i, 0))),
            compiler_params=pltpu.CompilerParams(dimension_semantics=("parallel",)),
        )(bs_j, bsp_j, npb_j)
        win2flat = win2flat_p.reshape(-1)[:L]
        flat2win = flat2win_p.reshape(-1)[:Lp]

        mappings = {
            "flat2win": flat2win,
            "win2flat": win2flat,
            "batch_start_indices_p": bsp_j,
            "x": order[0],
            "y": order[1],
            "x_shift": order[2],
            "y_shift": order[3],
        }
        return mappings


# ----------------------------------------------------------------------------
# NumPy reference = faithful port of the PyTorch forward (for verification)
# ----------------------------------------------------------------------------
def _reference_forward(coords, batch_size, window_shape, sparse_shape, group_size):
    coords = np.asarray(coords, dtype=np.int64)
    num_per_batch = np.bincount(coords[:, 0], minlength=batch_size)
    bs = np.concatenate([[0], np.cumsum(num_per_batch)])
    npp = (num_per_batch + group_size - 1) // group_size * group_size
    bsp = np.concatenate([[0], np.cumsum(npp)])
    flat2win = np.arange(bsp[-1])
    win2flat = np.arange(bs[-1])
    for i in range(batch_size):
        pad_pre = bsp[i] - bs[i]
        win2flat[bs[i]:bs[i + 1]] += pad_pre
        if num_per_batch[i] != npp[i]:
            pad = npp[i] - num_per_batch[i]
            end = bsp[i + 1] - pad
            flat2win[end:bsp[i + 1]] = flat2win[end - group_size:bsp[i + 1] - group_size]
        flat2win[bsp[i]:bsp[i + 1]] -= pad_pre
    mappings = {"flat2win": flat2win, "win2flat": win2flat, "batch_start_indices_p": bsp}
    n, m, _ = sparse_shape
    n2, m2, _ = window_shape
    n1 = int(np.ceil(n / n2) + 1)
    m1 = int(np.ceil(m / m2) + 1)
    for shifted in (False, True):
        if shifted:
            x = coords[:, 3] + n2 // 2
            y = coords[:, 2] + m2 // 2
        else:
            x = coords[:, 3]
            y = coords[:, 2]
        x1, y1 = x // n2, y // m2
        x2, y2 = x % n2, y % m2
        N2, M2, N1, M1 = 2 * n2, 2 * m2, 2 * n1, 2 * m1
        vx = (N1 * y1 + (-1) ** y1 * x1) * N2 * M2 + (-1) ** y1 * (M2 * x2 + (-1) ** x2 * y2)
        vx = vx + coords[:, 0] * sparse_shape[0] * sparse_shape[1] * 10
        vy = (M1 * x1 + (-1) ** x1 * y1) * M2 * N2 + (-1) ** x1 * (N2 * y2 + (-1) ** y2 * x2)
        vy = vy + coords[:, 0] * sparse_shape[0] * sparse_shape[1] * 10
        sfx = "_shift" if shifted else ""
        mappings["x" + sfx] = np.argsort(vx, kind="stable")
        mappings["y" + sfx] = np.argsort(vy, kind="stable")
    return mappings


if __name__ == "__main__":
    batch_size = 2
    sparse_shape = (16, 16, 4)
    window_shape = (4, 4, 4)
    group_size = 8
    pts_per_batch = (101, 160)   # batch 0 needs padding, batch 1 does not

    # deterministic example coords: unique (y, x) per batch, columns (b, z, y, x)
    key = jax.random.PRNGKey(0)
    rows = []
    for b, npts in enumerate(pts_per_batch):
        key, k1, k2 = jax.random.split(key, 3)
        flat = jax.random.permutation(k1, sparse_shape[0] * sparse_shape[1])[:npts]
        yy = (flat // sparse_shape[1]).astype(jnp.int32)
        xx = (flat % sparse_shape[1]).astype(jnp.int32)
        zz = jax.random.randint(k2, (npts,), 0, sparse_shape[2]).astype(jnp.int32)
        bb = jnp.full((npts,), b, dtype=jnp.int32)
        rows.append(jnp.stack([bb, zz, yy, xx], axis=1))
    coords = jnp.concatenate(rows, axis=0)

    module = FlattenedWindowMappingPallas(window_shape, sparse_shape, group_size)
    mappings = module(coords, batch_size)
    mappings = jax.tree_util.tree_map(jax.block_until_ready, mappings)

    ref = _reference_forward(np.asarray(coords), batch_size, window_shape,
                             sparse_shape, group_size)
    for k in ("flat2win", "win2flat", "batch_start_indices_p",
              "x", "y", "x_shift", "y_shift"):
        got = np.asarray(mappings[k]).astype(np.int64)
        want = np.asarray(ref[k]).astype(np.int64)
        assert got.shape == want.shape, (k, got.shape, want.shape)
        assert np.array_equal(got, want), k

    print("KERNEL_OK")
</pallas_src>

<mosaic_0001>
module attributes {stable_mosaic.version = 11 : i64} {
  func.func @_keys_kernel(%arg0: i32, %arg1: memref<3x8x128xi32, #tpu.memory_space<vmem>>, %arg2: memref<4x8x128xi32, #tpu.memory_space<vmem>>) attributes {dimension_semantics = [#tpu.dimension_semantics<parallel>], iteration_bounds = array<i64: 1>, scalar_prefetch = 0 : i64, scratch_operands = 0 : i64, tpu.core_type = #tpu.core_type<tc>, window_params = [{transform_indices = @transform_0, window_bounds = array<i64: 3, 8, 128>}, {transform_indices = @transform_1, window_bounds = array<i64: 4, 8, 128>}]} {
    %c0 = arith.constant 0 : index
    %c0_0 = arith.constant 0 : index
    %c0_1 = arith.constant 0 : index
    %0 = vector.load %arg1[%c0, %c0_0, %c0_1] : memref<3x8x128xi32, #tpu.memory_space<vmem>>, vector<1x8x128xi32>
    %1 = vector.shape_cast %0 : vector<1x8x128xi32> to vector<8x128xi32>
    %c2560_i32 = arith.constant 2560 : i32
    %2 = vector.broadcast %c2560_i32 : i32 to vector<8x128xi32>
    %3 = arith.muli %1, %2 : vector<8x128xi32>
    %c1 = arith.constant 1 : index
    %c0_2 = arith.constant 0 : index
    %c0_3 = arith.constant 0 : index
    %4 = vector.load %arg1[%c1, %c0_2, %c0_3] : memref<3x8x128xi32, #tpu.memory_space<vmem>>, vector<1x8x128xi32>
    %5 = vector.shape_cast %4 : vector<1x8x128xi32> to vector<8x128xi32>
    %c2 = arith.constant 2 : index
    %c0_4 = arith.constant 0 : index
    %c0_5 = arith.constant 0 : index
    %6 = vector.load %arg1[%c2, %c0_4, %c0_5] : memref<3x8x128xi32, #tpu.memory_space<vmem>>, vector<1x8x128xi32>
    %7 = vector.shape_cast %6 : vector<1x8x128xi32> to vector<8x128xi32>
    %c2_i32 = arith.constant 2 : i32
    %8 = vector.broadcast %c2_i32 : i32 to vector<8x128xi32>
    %9 = arith.shrsi %7, %8 : vector<8x128xi32>
    %c3_i32 = arith.constant 3 : i32
    %10 = vector.broadcast %c3_i32 : i32 to vector<8x128xi32>
    %11 = arith.andi %7, %10 : vector<8x128xi32>
    %c2_i32_6 = arith.constant 2 : i32
    %12 = vector.broadcast %c2_i32_6 : i32 to vector<8x128xi32>
    %13 = arith.shrsi %5, %12 : vector<8x128xi32>
    %c3_i32_7 = arith.constant 3 : i32
    %14 = vector.broadcast %c3_i32_7 : i32 to vector<8x128xi32>
    %15 = arith.andi %5, %14 : vector<8x128xi32>
    %c1_i32 = arith.constant 1 : i32
    %16 = vector.broadcast %c1_i32 : i32 to vector<8x128xi32>
    %17 = arith.andi %9, %16 : vector<8x128xi32>
    %c2_i32_8 = arith.constant 2 : i32
    %18 = vector.broadcast %c2_i32_8 : i32 to vector<8x128xi32>
    %19 = arith.muli %18, %17 : vector<8x128xi32>
    %c1_i32_9 = arith.constant 1 : i32
    %20 = vector.broadcast %c1_i32_9 : i32 to vector<8x128xi32>
    %21 = arith.subi %20, %19 : vector<8x128xi32>
    %c1_i32_10 = arith.constant 1 : i32
    %22 = vector.broadcast %c1_i32_10 : i32 to vector<8x128xi32>
    %23 = arith.andi %13, %22 : vector<8x128xi32>
    %c2_i32_11 = arith.constant 2 : i32
    %24 = vector.broadcast %c2_i32_11 : i32 to vector<8x128xi32>
    %25 = arith.muli %24, %23 : vector<8x128xi32>
    %c1_i32_12 = arith.constant 1 : i32
    %26 = vector.broadcast %c1_i32_12 : i32 to vector<8x128xi32>
    %27 = arith.subi %26, %25 : vector<8x128xi32>
    %c1_i32_13 = arith.constant 1 : i32
    %28 = vector.broadcast %c1_i32_13 : i32 to vector<8x128xi32>
    %29 = arith.andi %11, %28 : vector<8x128xi32>
    %c2_i32_14 = arith.constant 2 : i32
    %30 = vector.broadcast %c2_i32_14 : i32 to vector<8x128xi32>
    %31 = arith.muli %30, %29 : vector<8x128xi32>
    %c1_i32_15 = arith.constant 1 : i32
    %32 = vector.broadcast %c1_i32_15 : i32 to vector<8x128xi32>
    %33 = arith.subi %32, %31 : vector<8x128xi32>
    %c1_i32_16 = arith.constant 1 : i32
    %34 = vector.broadcast %c1_i32_16 : i32 to vector<8x128xi32>
    %35 = arith.andi %15, %34 : vector<8x128xi32>
    %c2_i32_17 = arith.constant 2 : i32
    %36 = vector.broadcast %c2_i32_17 : i32 to vector<8x128xi32>
    %37 = arith.muli %36, %35 : vector<8x128xi32>
    %c1_i32_18 = arith.constant 1 : i32
    %38 = vector.broadcast %c1_i32_18 : i32 to vector<8x128xi32>
    %39 = arith.subi %38, %37 : vector<8x128xi32>
    %c10_i32 = arith.constant 10 : i32
    %40 = vector.broadcast %c10_i32 : i32 to vector<8x128xi32>
    %41 = arith.muli %40, %13 : vector<8x128xi32>
    %42 = arith.muli %27, %9 : vector<8x128xi32>
    %43 = arith.addi %41, %42 : vector<8x128xi32>
    %c64_i32 = arith.constant 64 : i32
    %44 = vector.broadcast %c64_i32 : i32 to vector<8x128xi32>
    %45 = arith.muli %43, %44 : vector<8x128xi32>
    %c8_i32 = arith.constant 8 : i32
    %46 = vector.broadcast %c8_i32 : i32 to vector<8x128xi32>
    %47 = arith.muli %46, %11 : vector<8x128xi32>
    %48 = arith.muli %33, %15 : vector<8x128xi32>
    %49 = arith.addi %47, %48 : vector<8x128xi32>
    %50 = arith.muli %27, %49 : vector<8x128xi32>
    %51 = arith.addi %45, %50 : vector<8x128xi32>
    %52 = arith.addi %51, %3 : vector<8x128xi32>
    %c10_i32_19 = arith.constant 10 : i32
    %53 = vector.broadcast %c10_i32_19 : i32 to vector<8x128xi32>
    %54 = arith.muli %53, %9 : vector<8x128xi32>
    %55 = arith.muli %21, %13 : vector<8x128xi32>
    %56 = arith.addi %54, %55 : vector<8x128xi32>
    %c64_i32_20 = arith.constant 64 : i32
    %57 = vector.broadcast %c64_i32_20 : i32 to vector<8x128xi32>
    %58 = arith.muli %56, %57 : vector<8x128xi32>
    %c8_i32_21 = arith.constant 8 : i32
    %59 = vector.broadcast %c8_i32_21 : i32 to vector<8x128xi32>
    %60 = arith.muli %59, %15 : vector<8x128xi32>
    %61 = arith.muli %39, %11 : vector<8x128xi32>
    %62 = arith.addi %60, %61 : vector<8x128xi32>
    %63 = arith.muli %21, %62 : vector<8x128xi32>
    %64 = arith.addi %58, %63 : vector<8x128xi32>
    %65 = arith.addi %64, %3 : vector<8x128xi32>
    %c0_22 = arith.constant 0 : index
    %c0_23 = arith.constant 0 : index
    %c0_24 = arith.constant 0 : index
    %66 = vector.load %arg2[%c0_22, %c0_23, %c0_24] : memref<4x8x128xi32, #tpu.memory_space<vmem>>, vector<1x8x128xi32>
    %67 = vector.shape_cast %66 : vector<1x8x128xi32> to vector<8x128xi32>
    %68 = vector.shape_cast %52 : vector<8x128xi32> to vector<1x8x128xi32>
    tpu.vector_store %arg2[%c0_22, %c0_23, %c0_24], %68 {strides = array<i32>} : memref<4x8x128xi32, #tpu.memory_space<vmem>>, vector<1x8x128xi32>,
    %c1_25 = arith.constant 1 : index
    %c0_26 = arith.constant 0 : index
    %c0_27 = arith.constant 0 : index
    %69 = vector.load %arg2[%c1_25, %c0_26, %c0_27] : memref<4x8x128xi32, #tpu.memory_space<vmem>>, vector<1x8x128xi32>
    %70 = vector.shape_cast %69 : vector<1x8x128xi32> to vector<8x128xi32>
    %71 = vector.shape_cast %65 : vector<8x128xi32> to vector<1x8x128xi32>
    tpu.vector_store %arg2[%c1_25, %c0_26, %c0_27], %71 {strides = array<i32>} : memref<4x8x128xi32, #tpu.memory_space<vmem>>, vector<1x8x128xi32>,
    %c2_i32_28 = arith.constant 2 : i32
    %72 = vector.broadcast %c2_i32_28 : i32 to vector<8x128xi32>
    %73 = arith.addi %7, %72 : vector<8x128xi32>
    %c2_i32_29 = arith.constant 2 : i32
    %74 = vector.broadcast %c2_i32_29 : i32 to vector<8x128xi32>
    %75 = arith.addi %5, %74 : vector<8x128xi32>
    %c2_i32_30 = arith.constant 2 : i32
    %76 = vector.broadcast %c2_i32_30 : i32 to vector<8x128xi32>
    %77 = arith.shrsi %73, %76 : vector<8x128xi32>
    %c3_i32_31 = arith.constant 3 : i32
    %78 = vector.broadcast %c3_i32_31 : i32 to vector<8x128xi32>
    %79 = arith.andi %73, %78 : vector<8x128xi32>
    %c2_i32_32 = arith.constant 2 : i32
    %80 = vector.broadcast %c2_i32_32 : i32 to vector<8x128xi32>
    %81 = arith.shrsi %75, %80 : vector<8x128xi32>
    %c3_i32_33 = arith.constant 3 : i32
    %82 = vector.broadcast %c3_i32_33 : i32 to vector<8x128xi32>
    %83 = arith.andi %75, %82 : vector<8x128xi32>
    %c1_i32_34 = arith.constant 1 : i32
    %84 = vector.broadcast %c1_i32_34 : i32 to vector<8x128xi32>
    %85 = arith.andi %77, %84 : vector<8x128xi32>
    %c2_i32_35 = arith.constant 2 : i32
    %86 = vector.broadcast %c2_i32_35 : i32 to vector<8x128xi32>
    %87 = arith.muli %86, %85 : vector<8x128xi32>
    %c1_i32_36 = arith.constant 1 : i32
    %88 = vector.broadcast %c1_i32_36 : i32 to vector<8x128xi32>
    %89 = arith.subi %88, %87 : vector<8x128xi32>
    %c1_i32_37 = arith.constant 1 : i32
    %90 = vector.broadcast %c1_i32_37 : i32 to vector<8x128xi32>
    %91 = arith.andi %81, %90 : vector<8x128xi32>
    %c2_i32_38 = arith.constant 2 : i32
    %92 = vector.broadcast %c2_i32_38 : i32 to vector<8x128xi32>
    %93 = arith.muli %92, %91 : vector<8x128xi32>
    %c1_i32_39 = arith.constant 1 : i32
    %94 = vector.broadcast %c1_i32_39 : i32 to vector<8x128xi32>
    %95 = arith.subi %94, %93 : vector<8x128xi32>
    %c1_i32_40 = arith.constant 1 : i32
    %96 = vector.broadcast %c1_i32_40 : i32 to vector<8x128xi32>
    %97 = arith.andi %79, %96 : vector<8x128xi32>
    %c2_i32_41 = arith.constant 2 : i32
    %98 = vector.broadcast %c2_i32_41 : i32 to vector<8x128xi32>
    %99 = arith.muli %98, %97 : vector<8x128xi32>
    %c1_i32_42 = arith.constant 1 : i32
    %100 = vector.broadcast %c1_i32_42 : i32 to vector<8x128xi32>
    %101 = arith.subi %100, %99 : vector<8x128xi32>
    %c1_i32_43 = arith.constant 1 : i32
    %102 = vector.broadcast %c1_i32_43 : i32 to vector<8x128xi32>
    %103 = arith.andi %83, %102 : vector<8x128xi32>
    %c2_i32_44 = arith.constant 2 : i32
    %104 = vector.broadcast %c2_i32_44 : i32 to vector<8x128xi32>
    %105 = arith.muli %104, %103 : vector<8x128xi32>
    %c1_i32_45 = arith.constant 1 : i32
    %106 = vector.broadcast %c1_i32_45 : i32 to vector<8x128xi32>
    %107 = arith.subi %106, %105 : vector<8x128xi32>
    %c10_i32_46 = arith.constant 10 : i32
    %108 = vector.broadcast %c10_i32_46 : i32 to vector<8x128xi32>
    %109 = arith.muli %108, %81 : vector<8x128xi32>
    %110 = arith.muli %95, %77 : vector<8x128xi32>
    %111 = arith.addi %109, %110 : vector<8x128xi32>
    %c64_i32_47 = arith.constant 64 : i32
    %112 = vector.broadcast %c64_i32_47 : i32 to vector<8x128xi32>
    %113 = arith.muli %111, %112 : vector<8x128xi32>
    %c8_i32_48 = arith.constant 8 : i32
    %114 = vector.broadcast %c8_i32_48 : i32 to vector<8x128xi32>
    %115 = arith.muli %114, %79 : vector<8x128xi32>
    %116 = arith.muli %101, %83 : vector<8x128xi32>
    %117 = arith.addi %115, %116 : vector<8x128xi32>
    %118 = arith.muli %95, %117 : vector<8x128xi32>
    %119 = arith.addi %113, %118 : vector<8x128xi32>
    %120 = arith.addi %119, %3 : vector<8x128xi32>
    %c10_i32_49 = arith.constant 10 : i32
    %121 = vector.broadcast %c10_i32_49 : i32 to vector<8x128xi32>
    %122 = arith.muli %121, %77 : vector<8x128xi32>
    %123 = arith.muli %89, %81 : vector<8x128xi32>
    %124 = arith.addi %122, %123 : vector<8x128xi32>
    %c64_i32_50 = arith.constant 64 : i32
    %125 = vector.broadcast %c64_i32_50 : i32 to vector<8x128xi32>
    %126 = arith.muli %124, %125 : vector<8x128xi32>
    %c8_i32_51 = arith.constant 8 : i32
    %127 = vector.broadcast %c8_i32_51 : i32 to vector<8x128xi32>
    %128 = arith.muli %127, %83 : vector<8x128xi32>
    %129 = arith.muli %107, %79 : vector<8x128xi32>
    %130 = arith.addi %128, %129 : vector<8x128xi32>
    %131 = arith.muli %89, %130 : vector<8x128xi32>
    %132 = arith.addi %126, %131 : vector<8x128xi32>
    %133 = arith.addi %132, %3 : vector<8x128xi32>
    %c2_52 = arith.constant 2 : index
    %c0_53 = arith.constant 0 : index
    %c0_54 = arith.constant 0 : index
    %134 = vector.load %arg2[%c2_52, %c0_53, %c0_54] : memref<4x8x128xi32, #tpu.memory_space<vmem>>, vector<1x8x128xi32>
    %135 = vector.shape_cast %134 : vector<1x8x128xi32> to vector<8x128xi32>
    %136 = vector.shape_cast %120 : vector<8x128xi32> to vector<1x8x128xi32>
    tpu.vector_store %arg2[%c2_52, %c0_53, %c0_54], %136 {strides = array<i32>} : memref<4x8x128xi32, #tpu.memory_space<vmem>>, vector<1x8x128xi32>,
    %c3 = arith.constant 3 : index
    %c0_55 = arith.constant 0 : index
    %c0_56 = arith.constant 0 : index
    %137 = vector.load %arg2[%c3, %c0_55, %c0_56] : memref<4x8x128xi32, #tpu.memory_space<vmem>>, vector<1x8x128xi32>
    %138 = vector.shape_cast %137 : vector<1x8x128xi32> to vector<8x128xi32>
    %139 = vector.shape_cast %133 : vector<8x128xi32> to vector<1x8x128xi32>
    tpu.vector_store %arg2[%c3, %c0_55, %c0_56], %139 {strides = array<i32>} : memref<4x8x128xi32, #tpu.memory_space<vmem>>, vector<1x8x128xi32>,
    return
  }
  func.func @transform_0(%arg0: i32) -> (i32, i32, i32) {
    %c0_i32 = arith.constant 0 : i32
    %c0_i32_0 = arith.constant 0 : i32
    %c0_i32_1 = arith.constant 0 : i32
    return %c0_i32, %arg0, %c0_i32_0 : i32, i32, i32
  }
  func.func @transform_1(%arg0: i32) -> (i32, i32, i32) {
    %c0_i32 = arith.constant 0 : i32
    %c0_i32_0 = arith.constant 0 : i32
    %c0_i32_1 = arith.constant 0 : i32
    return %c0_i32, %arg0, %c0_i32_0 : i32, i32, i32
  }
}

</mosaic_0001>

<bundles_post_ra>
// kernel: tpu_custom_call.1
= control target key start
LH: loop header
LB: loop body
LE: loop exit
PB: predicated region body
PF: predicated region fallthrough
CT: control target
= control target key end

     0   :  { %6 = vsyncpa [#allocation3], 0  ;;  %s229_s0 = inlined_call_operand.hbm [shape: s32[3,8,128], index: 0, kind: input, shape index: {}]   ;;  %s230_s1 = inlined_call_operand.hbm [shape: s32[4,8,128], index: 1, kind: output, shape index: {}]  }
   0x1   :  { %7 = vsyncpa [#allocation4], 0  ;;  %s179_s6 = smov [#allocation2]   ;;  %s131_s10 = scalar_lea.hbm %s229_s0, 384 }
   0x2   :  { %s13_s7 = sshll.u32 %s179_s6, 4  ;;  %p132_p0 = scmp.ne.s32.totalorder %s229_s0, %s131_s10  ;;  %s14_s7 = int_to_ptr.vmem [resolvable:$true] %s13_s7 }
   0x3   :  { %p135_p1 = scmp.lt.u32.totalorder %s131_s10, %s229_s0 }
   0x5   :  { %p137_p2 = pnand %p135_p1, %p132_p0 }
   0x7   :  { %140 = shalt.err (!%p137_p2)
}
   0x8   :  { %s141_s15 = scalar_lea.vmem %s14_s7, 384  ;;  %p146_p4 = scmp.lt.s32.totalorder %s14_s7, %s14_s7 }
   0x9   :  { %p142_p3 = scmp.ne.s32.totalorder %s14_s7, %s141_s15  ;;  %p147_p5 = scmp.lt.s32.totalorder %s141_s15, %s141_s15 }
   0xb   :  { %p148_p6 = por %p147_p5, %p146_p4 }
   0xd   :  { %p149_p7 = pnand %p148_p6, %p142_p3 }
   0xf   :  { %152 = shalt.err (!%p149_p7)
}
  0x10   :  { %s180_s16 = smov 128   ;;  %s181_s17 = smov 8  }
  0x11   :  { %19 = dma.hbm_to_vmem [thread:$0]  %s229_s0, 384, %s14_s7, [#allocation3], %s180_s16, %s180_s16, %s181_s17  }
  0x12   :  { %175 = dma.done.wait [#allocation3], 384  }
  0x13   :  { %176 = vsyncadd [#allocation3], 4294966912  ;;  %v23_v0 = vld [vmem:[#allocation2] sm:$0xff]  ;;  %v26_v1 = vld [vmem:[#allocation2 + $0x8] sm:$0xff]  ;;  %s182_s0 = smov [#allocation5]  }
  0x14   :  { %v28_v2 = vld [vmem:[#allocation2 + $0x10] sm:$0xff]  ;;  %v31_v5 = vshra.s32 %v26_v1, 2  ;;  %v208_v6 = vmul.u32 2560, %v23_v0  ;;  %v32_v7 = vand.u32 3, %v26_v1  ;;  %v69_v9 = vadd.s32 2, %v26_v1  ;;  %s115_s20 = sshll.u32 %s182_s0, 4  ;;  %s116_s20 = int_to_ptr.vmem [resolvable:$true] %s115_s20 }
  0x15   :  { %v29_v3 = vshra.s32 %v28_v2, 2  ;;  %v30_v4 = vand.u32 3, %v28_v2  ;;  %v68_v8 = vadd.s32 2, %v28_v2  ;;  %s153_s21 = scalar_lea.vmem %s116_s20, 512  ;;  %p158_p9 = scmp.lt.s32.totalorder %s116_s20, %s116_s20 }
  0x16   :  { %v36_v10 = vand.u32 1, %v31_v5  ;;  %v45_v12 = vmul.u32 10, %v31_v5  ;;  %v42_v15 = vand.u32 1, %v32_v7  ;;  %v59_v17 = vmul.u32 8, %v32_v7  ;;  %p154_p8 = scmp.ne.s32.totalorder %s116_s20, %s153_s21  ;;  %p159_p10 = scmp.lt.s32.totalorder %s153_s21, %s153_s21 }
  0x17   :  { %v39_v11 = vand.u32 1, %v30_v4  ;;  %v49_v13 = vmul.u32 8, %v30_v4  ;;  %v33_v14 = vand.u32 1, %v29_v3  ;;  %v55_v16 = vmul.u32 10, %v29_v3 }
  0x18   :  { %v37_v18 = vmul.u32 2, %v36_v10  ;;  %v70_v20 = vshra.s32 %v68_v8, 2  ;;  %v71_v21 = vand.u32 3, %v68_v8  ;;  %v43_v23 = vmul.u32 2, %v42_v15  ;;  %p160_p11 = por %p159_p10, %p158_p9 }
  0x19   :  { %v40_v19 = vmul.u32 2, %v39_v11  ;;  %v34_v22 = vmul.u32 2, %v33_v14  ;;  %v72_v24 = vshra.s32 %v69_v9, 2  ;;  %v73_v25 = vand.u32 3, %v69_v9 }
  0x1a   :  { %v38_v26 = vsub.s32 1, %v37_v18  ;;  %v80_v28 = vand.u32 1, %v71_v21  ;;  %v90_v29 = vmul.u32 8, %v71_v21  ;;  %v44_v31 = vsub.s32 1, %v43_v23  ;;  %p161_p12 = pnand %p160_p11, %p154_p8 }
  0x1b   :  { %v41_v27 = vsub.s32 1, %v40_v19  ;;  %v35_v30 = vsub.s32 1, %v34_v22  ;;  %v77_v32 = vand.u32 1, %v72_v24  ;;  %v86_v33 = vmul.u32 10, %v72_v24 }
  0x1c   :  { %v46_v34 = vmul.u32 %v38_v26, %v29_v3  ;;  %v74_v36 = vand.u32 1, %v70_v20  ;;  %v83_v37 = vand.u32 1, %v73_v25  ;;  %v60_v39 = vmul.u32 %v44_v31, %v30_v4 }
  0x1d   :  { %v50_v35 = vmul.u32 %v41_v27, %v32_v7  ;;  %v56_v38 = vmul.u32 %v35_v30, %v31_v5 }
  0x1e   :  { %v47_v40 = vadd.s32 %v46_v34, %v45_v12  ;;  %v78_v42 = vmul.u32 2, %v77_v32  ;;  %v81_v43 = vmul.u32 2, %v80_v28  ;;  %v61_v45 = vadd.s32 %v60_v39, %v59_v17 }
  0x1f   :  { %v51_v41 = vadd.s32 %v50_v35, %v49_v13  ;;  %v57_v44 = vadd.s32 %v56_v38, %v55_v16  ;;  %v75_v46 = vmul.u32 2, %v74_v36  ;;  %v84_v47 = vmul.u32 2, %v83_v37 }
  0x20   :  { %v48_v48 = vmul.u32 64, %v47_v40  ;;  %v79_v50 = vsub.s32 1, %v78_v42  ;;  %v82_v51 = vsub.s32 1, %v81_v43  ;;  %v62_v53 = vmul.u32 %v61_v45, %v35_v30 }
  0x21   :  { %v52_v49 = vmul.u32 %v51_v41, %v38_v26  ;;  %v58_v52 = vmul.u32 64, %v57_v44  ;;  %v76_v54 = vsub.s32 1, %v75_v46  ;;  %v85_v55 = vsub.s32 1, %v84_v47 }
  0x22   :  { %v87_v57 = vmul.u32 %v79_v50, %v70_v20  ;;  %v91_v58 = vmul.u32 %v82_v51, %v73_v25 }
  0x23   :  { %v53_v56 = vadd.s32 %v52_v49, %v48_v48  ;;  %v63_v59 = vadd.s32 %v62_v53, %v58_v52  ;;  %v96_v60 = vmul.u32 10, %v70_v20  ;;  %v97_v61 = vmul.u32 %v76_v54, %v72_v24 }
  0x24   :  { %v88_v63 = vadd.s32 %v87_v57, %v86_v33  ;;  %v92_v0 = vadd.s32 %v91_v58, %v90_v29  ;;  %v100_v1 = vmul.u32 8, %v73_v25  ;;  %v101_v4 = vmul.u32 %v85_v55, %v71_v21 }
  0x25   :  { %v54_v62 = vadd.s32 %v53_v56, %v208_v6  ;;  %v64_v2 = vadd.s32 %v63_v59, %v208_v6  ;;  %v98_v3 = vadd.s32 %v97_v61, %v96_v60 }
  0x26   :  { %v89_v5 = vmul.u32 64, %v88_v63  ;;  %v93_v7 = vmul.u32 %v92_v0, %v79_v50  ;;  %v102_v9 = vadd.s32 %v101_v4, %v100_v1 }
  0x27   :  { %65 = vst [vmem:[#allocation5] sm:$0xff] %v54_v62  ;;  %67 = vst [vmem:[#allocation5 + $0x8] sm:$0xff] %v64_v2  ;;  %v99_v8 = vmul.u32 64, %v98_v3 }
  0x28   :  { %v94_v10 = vadd.s32 %v93_v7, %v89_v5  ;;  %v103_v11 = vmul.u32 %v102_v9, %v76_v54 }
  0x2a   :  { %v95_v12 = vadd.s32 %v94_v10, %v208_v6  ;;  %v104_v13 = vadd.s32 %v103_v11, %v99_v8 }
  0x2c   :  { %107 = vst [vmem:[#allocation5 + $0x10] sm:$0xff] %v95_v12  ;;  %v105_v14 = vadd.s32 %v104_v13, %v208_v6 }
  0x2e   :  { %109 = vst [vmem:[#allocation5 + $0x18] sm:$0xff] %v105_v14 }
  0x2f   :  { %164 = shalt.err (!%p161_p12)
}
  0x30   :  { %s165_s24 = scalar_lea.hbm %s230_s1, 512 }
  0x31   :  { %p166_p13 = scmp.ne.s32.totalorder %s230_s1, %s165_s24  ;;  %p169_p0 = scmp.lt.u32.totalorder %s165_s24, %s230_s1 }
  0x33   :  { %p171_p1 = pnand %p169_p0, %p166_p13 }
  0x35   :  { %174 = shalt.err (!%p171_p1)
}
  0x36   :  { %121 = dma.vmem_to_hbm [thread:$0]  %s116_s20, 512, %s230_s1, [#allocation4], %s180_s16, %s180_s16, %s181_s17  }
  0x37   :  { %177 = dma.done.wait [#allocation4], 512  }
  0x38   :  { %178 = vsyncadd [#allocation4], 4294966784 }
  0x39   :  { %125 = vsyncpa [#allocation3], 1 }
  0x3a   :  { %126 = vsyncpa [#allocation4], 1 }

</bundles_post_ra>
